<compile_context>
chip_gen: v7x
topology: tpu7x:2x2x1
jax: 0.10.0
libtpu: 0.0.40
codegen_flags: <defaults>
</compile_context>

<pallas_src>
import functools

import jax
import jax.numpy as jnp
from jax.experimental import pallas as pl
from jax.experimental.pallas import tpu as pltpu


_LANE = 128


def _round_up(x, m):
    return (x + m - 1) // m * m


def _act(name):
    if name == "relu":
        return lambda v: jnp.maximum(v, 0.0)
    if name == "gelu":
        return jax.nn.gelu
    if name == "tanh":
        return jnp.tanh
    raise ValueError("Activation function can be: relu, gelu or tanh")


def _vmem_capacity_bytes():
    """Physical VMEM per core; conservative 64 MiB (v7x) fallback."""
    try:
        info = pltpu.get_tpu_info()
        for name in ("vmem_capacity_bytes", "vmem_bytes", "vmem_size_bytes"):
            v = getattr(info, name, None)
            if v:
                return int(v)
    except Exception:
        pass
    return 64 * 1024 * 1024


def _xapi_attend_kernel(x1_ref, x2_ref, w1_ref, b1_ref, w2_ref, b2_ref,
                        *rest, act_fn, flatten_attn):
    """One grid step = `block_b` batch samples, everything resident in VMEM.

    x1_ref : [bb, L1, D] bf16        x2_ref : [bb, L2, D] bf16
    w1_ref : [D, Hp] bf16            b1_ref : [1, Hp] f32
    w2_ref : [Hp, Hp] bf16           b2_ref : [1, Hp] f32
    (mask_ref : [bb*L1, bb*L2] f32   -- only when flatten_attn)
    beta_ref : [bb, L1, D]           alpha_ref : [bb, L2, D]
    """
    if flatten_attn:
        mask_ref, beta_ref, alpha_ref = rest
    else:
        beta_ref, alpha_ref = rest
        mask_ref = None

    act = _act(act_fn)
    bb, l1, d = x1_ref.shape
    l2 = x2_ref.shape[1]

    x1 = x1_ref[...]                                   # bf16 [bb, l1, d]
    x2 = x2_ref[...]                                   # bf16 [bb, l2, d]

    # ---- fused 2-layer MLP over both inputs (one big matmul per layer) -----
    rows = jnp.concatenate([x1.reshape(bb * l1, d),
                            x2.reshape(bb * l2, d)], axis=0)   # [bb*(l1+l2), d]
    h = jnp.dot(rows, w1_ref[...],
                preferred_element_type=jnp.float32) + b1_ref[...]
    h = act(h)
    h = jnp.dot(h.astype(jnp.bfloat16), w2_ref[...],
                preferred_element_type=jnp.float32) + b2_ref[...]
    h = act(h)                                         # [bb*(l1+l2), Hp] f32
    f = h.astype(jnp.bfloat16)
    f1 = f[:bb * l1, :]                                # [bb*l1, Hp]
    f2 = f[bb * l1:, :]                                # [bb*l2, Hp]

    if flatten_attn:
        # Batch folded into M/N: one lane-dense [bb*l1, bb*l2] score matrix;
        # the additive block-diagonal bias (-1e30 off-sample) makes the
        # off-sample probabilities exactly 0, so the flat beta/alpha matmuls
        # reproduce the per-sample results.
        m, n = bb * l1, bb * l2
        e = jax.lax.dot_general(f1, f2, (((1,), (1,)), ((), ())),
                                preferred_element_type=jnp.float32)   # [m, n]
        e = e + mask_ref[...]

        # row softmax (per-row max -> denominator >= 1, no 0/inf risk)
        ex_r = jnp.exp(e - jnp.max(e, axis=1, keepdims=True))
        inv_r = pl.reciprocal(jnp.sum(ex_r, axis=1, keepdims=True), approx=True)
        # column softmax (per-column max)
        ex_c = jnp.exp(e - jnp.max(e, axis=0, keepdims=True))
        inv_c = pl.reciprocal(jnp.sum(ex_c, axis=0, keepdims=True), approx=True)

        x1f = x1.reshape(m, d)
        x2f = x2.reshape(n, d)
        # beta: normalize AFTER the matmul ([m,1] broadcast over d).
        beta = jnp.dot(ex_r.astype(jnp.bfloat16), x2f,
                       preferred_element_type=jnp.float32) * inv_r   # [m, d]
        # alpha: pre-scale with the [1,n] denominator (avoids a lane->sublane
        # relayout of the column sums).
        p_c = (ex_c * inv_c).astype(jnp.bfloat16)
        alpha = jax.lax.dot_general(p_c, x1f, (((0,), (0,)), ((), ())),
                                    preferred_element_type=jnp.float32)  # [n, d]

        beta_ref[...] = beta.reshape(bb, l1, d).astype(beta_ref.dtype)
        alpha_ref[...] = alpha.reshape(bb, l2, d).astype(alpha_ref.dtype)
    else:
        # Per-sample batched form (preferred when L1, L2 are already >= 128).
        hp = w1_ref.shape[1]
        f1b = f1.reshape(bb, l1, hp)
        f2b = f2.reshape(bb, l2, hp)
        e = jax.lax.dot_general(f1b, f2b, (((2,), (2,)), ((0,), (0,))),
                                preferred_element_type=jnp.float32)   # [bb,l1,l2]

        ex_r = jnp.exp(e - jnp.max(e, axis=2, keepdims=True))
        inv_r = pl.reciprocal(jnp.sum(ex_r, axis=2, keepdims=True), approx=True)
        ex_c = jnp.exp(e - jnp.max(e, axis=1, keepdims=True))
        inv_c = pl.reciprocal(jnp.sum(ex_c, axis=1, keepdims=True), approx=True)

        beta = jax.lax.dot_general(ex_r.astype(jnp.bfloat16), x2,
                                   (((2,), (1,)), ((0,), (0,))),
                                   preferred_element_type=jnp.float32) * inv_r
        p_c = (ex_c * inv_c).astype(jnp.bfloat16)
        alpha = jax.lax.dot_general(p_c, x1,
                                    (((1,), (1,)), ((0,), (0,))),
                                    preferred_element_type=jnp.float32)

        beta_ref[...] = beta.astype(beta_ref.dtype)
        alpha_ref[...] = alpha.astype(alpha_ref.dtype)


def xapi_attend(x1, x2, w1, b1, w2, b2, *, act_fn="relu", block_b=None,
                flatten_attn=None):
    """XAPIAttend forward (eval mode).

    Layout: x1 [B, L1, D], x2 [B, L2, D], w1 [D, H] (transposed vs. PyTorch),
    b1 [H], w2 [H, H], b2 [H].  Returns (beta [B, L1, D], alpha [B, L2, D]).
    """
    B, L1, D = x1.shape
    B2, L2, D2 = x2.shape
    assert B2 == B and D2 == D
    H = w1.shape[1]
    assert w1.shape == (D, H) and w2.shape == (H, H)

    out_dtype = x1.dtype
    out_isz = jnp.dtype(out_dtype).itemsize
    Hp = _round_up(H, _LANE)
    L = L1 + L2

    if flatten_attn is None:
        flatten_attn = (L1 < _LANE and L2 < _LANE)

    # bf16 activations: the kernel only ever consumes them as MXU operands,
    # so this is lossless and halves input HBM->VMEM traffic.
    x1b = x1.astype(jnp.bfloat16)
    x2b = x2.astype(jnp.bfloat16)

    # Only the weights' hidden dim is zero-padded to the lane width (exact:
    # zero weight cols / zero bias + act(0)==0 keep padded columns at 0).
    w1p = jnp.zeros((D, Hp), jnp.bfloat16).at[:, :H].set(w1.astype(jnp.bfloat16))
    w2p = jnp.zeros((Hp, Hp), jnp.bfloat16).at[:H, :H].set(w2.astype(jnp.bfloat16))
    b1p = jnp.zeros((1, Hp), jnp.float32).at[0, :H].set(
        b1.astype(jnp.float32).reshape(H))
    b2p = jnp.zeros((1, Hp), jnp.float32).at[0, :H].set(
        b2.astype(jnp.float32).reshape(H))

    # ---- block_b / grid selection -------------------------------------------
    vmem_cap = _vmem_capacity_bytes()
    budget = int(0.55 * vmem_cap)

    def vmem_estimate(bb):
        rows = bb * L
        in_b = 2 * rows * D * 2                       # double-buffered bf16 x1+x2
        out_b = 2 * rows * D * out_isz                # double-buffered beta+alpha
        w_b = 2 * ((D * Hp + Hp * Hp) * 2 + 2 * Hp * 4)
        mlp_b = rows * D * 2 + 2 * rows * Hp * 4 + rows * Hp * 2
        if flatten_attn:
            attn_b = 5 * (bb * L1) * (bb * L2) * 4    # e, ex_r, ex_c, bias, ...
        else:
            attn_b = 4 * bb * L1 * L2 * 4
        acc_b = rows * D * 4
        return in_b + out_b + w_b + mlp_b + attn_b + acc_b

    if block_b is None:
        # ~512 (flattened) / ~1024 rows per step: near the HBM roofline on
        # v5e/v6e and enough M to feed the 256-wide MXUs of v6e/v7x.
        target_rows = 512 if flatten_attn else 1024
        block_b = max(1, min(B, target_rows // max(L, 1)))
        if B >= 2:
            # >= 2 grid steps so "parallel" can feed both v7x TensorCores.
            block_b = max(1, min(block_b, B // 2))
    block_b = max(1, min(int(block_b), B))
    while B % block_b:
        block_b -= 1
    while block_b > 1 and vmem_estimate(block_b) > budget:
        block_b -= 1
        while B % block_b:
            block_b -= 1
    grid = (B // block_b,)

    vmem_limit = int(min(int(0.9 * vmem_cap),
                         max(32 * 1024 * 1024, 4 * vmem_estimate(block_b))))

    # ---- block-diagonal additive bias for the flattened attention ----------
    in_specs = [
        pl.BlockSpec((block_b, L1, D), lambda b: (b, 0, 0)),
        pl.BlockSpec((block_b, L2, D), lambda b: (b, 0, 0)),
        pl.BlockSpec((D, Hp), lambda b: (0, 0)),       # resident weights
        pl.BlockSpec((1, Hp), lambda b: (0, 0)),
        pl.BlockSpec((Hp, Hp), lambda b: (0, 0)),
        pl.BlockSpec((1, Hp), lambda b: (0, 0)),
    ]
    args = [x1b, x2b, w1p, b1p, w2p, b2p]
    if flatten_attn:
        rs = jnp.repeat(jnp.arange(block_b, dtype=jnp.int32), L1)   # [bb*L1]
        cs = jnp.repeat(jnp.arange(block_b, dtype=jnp.int32), L2)   # [bb*L2]
        attn_bias = jnp.where(rs[:, None] == cs[None, :],
                              jnp.float32(0), jnp.float32(-1e30))
        in_specs.append(pl.BlockSpec((block_b * L1, block_b * L2),
                                     lambda b: (0, 0)))
        args.append(attn_bias)

    # ---- cost estimate (lets XLA overlap neighbouring graph work) ----------
    rows_total = B * L
    mlp_flops = 2 * rows_total * (D * Hp + Hp * Hp)
    if flatten_attn:
        steps = B // block_b
        attn_flops = steps * 2 * (block_b * L1) * (block_b * L2) * (Hp + 2 * D)
        exp_count = steps * 2 * (block_b * L1) * (block_b * L2)
    else:
        attn_flops = 2 * B * L1 * L2 * (Hp + 2 * D)
        exp_count = 2 * B * L1 * L2
    bytes_accessed = (B * L * D * 2                      # bf16 inputs
                      + B * L * D * out_isz              # outputs
                      + (w1p.size + w2p.size) * 2 + (b1p.size + b2p.size) * 4
                      + (args[-1].size * 4 if flatten_attn else 0))
    cost = pl.CostEstimate(flops=int(mlp_flops + attn_flops),
                           transcendentals=int(exp_count),
                           bytes_accessed=int(bytes_accessed))

    kernel = functools.partial(_xapi_attend_kernel, act_fn=act_fn,
                               flatten_attn=flatten_attn)

    beta, alpha = pl.pallas_call(
        kernel,
        out_shape=(jax.ShapeDtypeStruct((B, L1, D), out_dtype),
                   jax.ShapeDtypeStruct((B, L2, D), out_dtype)),
        grid_spec=pltpu.PrefetchScalarGridSpec(
            num_scalar_prefetch=0,
            grid=grid,
            in_specs=in_specs,
            out_specs=[
                pl.BlockSpec((block_b, L1, D), lambda b: (b, 0, 0)),
                pl.BlockSpec((block_b, L2, D), lambda b: (b, 0, 0)),
            ],
        ),
        compiler_params=pltpu.CompilerParams(
            dimension_semantics=("parallel",),
            vmem_limit_bytes=vmem_limit,
        ),
        cost_estimate=cost,
    )(*args)

    return beta, alpha


def xapi_attend_ref(x1, x2, w1, b1, w2, b2, act_fn="relu"):
    """Pure-JAX reference with the same precision policy as the kernel
    (bf16 MXU operands, f32 accumulation / elementwise, exact softmax)."""
    act = _act(act_fn)
    c = lambda a: a.astype(jnp.bfloat16)

    def mlp(x):
        h = act(jnp.dot(c(x), c(w1), preferred_element_type=jnp.float32) + b1)
        h = act(jnp.dot(c(h), c(w2), preferred_element_type=jnp.float32) + b2)
        return h

    f1 = mlp(x1)
    f2 = mlp(x2)
    e = jnp.einsum('bld,bkd->blk', c(f1), c(f2),
                   preferred_element_type=jnp.float32)
    p_row = jax.nn.softmax(e, axis=-1)        # softmax(e, -1)
    p_col = jax.nn.softmax(e, axis=-2)        # softmax(e^T, -1) transposed
    beta = jnp.einsum('blk,bkd->bld', c(p_row), c(x2),
                      preferred_element_type=jnp.float32)
    alpha = jnp.einsum('blk,bld->bkd', c(p_col), c(x1),
                       preferred_element_type=jnp.float32)
    return beta.astype(x1.dtype), alpha.astype(x2.dtype)


if __name__ == "__main__":
    # batch=2, seq lengths 8/8, input_size=32, hidden_size=32, act_fn='relu',
    # drop_prob ignored (eval mode).
    B, L1, L2, D, H = 2, 8, 8, 32, 32
    key = jax.random.PRNGKey(0)
    k1, k2, k3, k4, k5, k6 = jax.random.split(key, 6)

    x1 = jax.random.normal(k1, (B, L1, D), dtype=jnp.float32)
    x2 = jax.random.normal(k2, (B, L2, D), dtype=jnp.float32)

    bound1 = 1.0 / (D ** 0.5)
    bound2 = 1.0 / (H ** 0.5)
    w1 = jax.random.uniform(k3, (D, H), minval=-bound1, maxval=bound1,
                            dtype=jnp.float32)
    b1 = jax.random.uniform(k4, (H,), minval=-bound1, maxval=bound1,
                            dtype=jnp.float32)
    w2 = jax.random.uniform(k5, (H, H), minval=-bound2, maxval=bound2,
                            dtype=jnp.float32)
    b2 = jax.random.uniform(k6, (H,), minval=-bound2, maxval=bound2,
                            dtype=jnp.float32)

    beta_r, alpha_r = xapi_attend_ref(x1, x2, w1, b1, w2, b2)

    # 1) default path: flattened lane-dense attention, grid=(2,) (>= 1 step/TC).
    beta, alpha = xapi_attend(x1, x2, w1, b1, w2, b2)
    jax.block_until_ready((beta, alpha))
    assert beta.shape == (B, L1, D) and alpha.shape == (B, L2, D)
    # Tolerance covers bf16 MXU rounding + approx-reciprocal softmax denom.
    assert jnp.allclose(beta, beta_r, atol=1e-2, rtol=1e-2)
    assert jnp.allclose(alpha, alpha_r, atol=1e-2, rtol=1e-2)

    # 2) flattened attention with >1 sample per step (exercises the
    #    block-diagonal mask path).
    beta2, alpha2 = xapi_attend(x1, x2, w1, b1, w2, b2, block_b=2)
    jax.block_until_ready((beta2, alpha2))
    assert jnp.allclose(beta2, beta_r, atol=1e-2, rtol=1e-2)
    assert jnp.allclose(alpha2, alpha_r, atol=1e-2, rtol=1e-2)

    # 3) per-sample batched attention path (the one used when L1, L2 >= 128).
    beta3, alpha3 = xapi_attend(x1, x2, w1, b1, w2, b2, flatten_attn=False)
    jax.block_until_ready((beta3, alpha3))
    assert jnp.allclose(beta3, beta_r, atol=1e-2, rtol=1e-2)
    assert jnp.allclose(alpha3, alpha_r, atol=1e-2, rtol=1e-2)

    print("KERNEL_OK")
</pallas_src>

<mosaic_0001>
module attributes {stable_mosaic.version = 11 : i64} {
  func.func @_xapi_attend_kernel(%arg0: i32, %arg1: memref<1x8x32xbf16, #tpu.memory_space<vmem>>, %arg2: memref<1x8x32xbf16, #tpu.memory_space<vmem>>, %arg3: memref<32x128xbf16, #tpu.memory_space<vmem>>, %arg4: memref<1x128xf32, #tpu.memory_space<vmem>>, %arg5: memref<128x128xbf16, #tpu.memory_space<vmem>>, %arg6: memref<1x128xf32, #tpu.memory_space<vmem>>, %arg7: memref<8x8xf32, #tpu.memory_space<vmem>>, %arg8: memref<1x8x32xf32, #tpu.memory_space<vmem>>, %arg9: memref<1x8x32xf32, #tpu.memory_space<vmem>>) attributes {dimension_semantics = [#tpu.dimension_semantics<parallel>], iteration_bounds = array<i64: 2>, scalar_prefetch = 0 : i64, scratch_operands = 0 : i64, tpu.core_type = #tpu.core_type<tc>, window_params = [{transform_indices = @transform_0, window_bounds = array<i64: 1, 8, 32>}, {transform_indices = @transform_1, window_bounds = array<i64: 1, 8, 32>}, {pipeline_mode = #tpu.pipeline_mode<synchronous>, transform_indices = @transform_2, window_bounds = array<i64: 32, 128>}, {pipeline_mode = #tpu.pipeline_mode<synchronous>, transform_indices = @transform_3, window_bounds = array<i64: 1, 128>}, {pipeline_mode = #tpu.pipeline_mode<synchronous>, transform_indices = @transform_4, window_bounds = array<i64: 128, 128>}, {pipeline_mode = #tpu.pipeline_mode<synchronous>, transform_indices = @transform_5, window_bounds = array<i64: 1, 128>}, {pipeline_mode = #tpu.pipeline_mode<synchronous>, transform_indices = @transform_6, window_bounds = array<i64: 8, 8>}, {transform_indices = @transform_7, window_bounds = array<i64: 1, 8, 32>}, {transform_indices = @transform_8, window_bounds = array<i64: 1, 8, 32>}]} {
    %c0 = arith.constant 0 : index
    %c0_0 = arith.constant 0 : index
    %c0_1 = arith.constant 0 : index
    %0 = vector.load %arg1[%c0, %c0_0, %c0_1] : memref<1x8x32xbf16, #tpu.memory_space<vmem>>, vector<1x8x32xbf16>
    %c0_2 = arith.constant 0 : index
    %c0_3 = arith.constant 0 : index
    %c0_4 = arith.constant 0 : index
    %1 = vector.load %arg2[%c0_2, %c0_3, %c0_4] : memref<1x8x32xbf16, #tpu.memory_space<vmem>>, vector<1x8x32xbf16>
    %2 = vector.shape_cast %0 : vector<1x8x32xbf16> to vector<8x32xbf16>
    %3 = vector.shape_cast %1 : vector<1x8x32xbf16> to vector<8x32xbf16>
    %4 = tpu.concatenate %2, %3 in 0 : vector<8x32xbf16>, vector<8x32xbf16> -> vector<16x32xbf16>
    %c0_5 = arith.constant 0 : index
    %c0_6 = arith.constant 0 : index
    %5 = vector.load %arg3[%c0_5, %c0_6] : memref<32x128xbf16, #tpu.memory_space<vmem>>, vector<32x128xbf16>
    %cst = arith.constant dense<0.000000e+00> : vector<16x128xf32>
    %6 = tpu.matmul %4, %5, %cst {dimension_numbers = #tpu.dot_dimension_numbers<[1], [0], [0], [1], [0, 0, 1, 1], [], []>} : vector<16x32xbf16>, vector<32x128xbf16>, vector<16x128xf32> -> vector<16x128xf32>
    %c0_7 = arith.constant 0 : index
    %c0_8 = arith.constant 0 : index
    %7 = vector.load %arg4[%c0_7, %c0_8] : memref<1x128xf32, #tpu.memory_space<vmem>>, vector<1x128xf32>
    %8 = vector.broadcast %7 : vector<1x128xf32> to vector<16x128xf32>
    %9 = arith.addf %6, %8 : vector<16x128xf32>
    %cst_9 = arith.constant 0.000000e+00 : f32
    %10 = vector.broadcast %cst_9 : f32 to vector<16x128xf32>
    %11 = arith.maximumf %9, %10 : vector<16x128xf32>
    %12 = arith.truncf %11 : vector<16x128xf32> to vector<16x128xbf16>
    %c0_10 = arith.constant 0 : index
    %c0_11 = arith.constant 0 : index
    %13 = vector.load %arg5[%c0_10, %c0_11] : memref<128x128xbf16, #tpu.memory_space<vmem>>, vector<128x128xbf16>
    %cst_12 = arith.constant dense<0.000000e+00> : vector<16x128xf32>
    %14 = tpu.matmul %12, %13, %cst_12 {dimension_numbers = #tpu.dot_dimension_numbers<[1], [0], [0], [1], [0, 0, 1, 1], [], []>} : vector<16x128xbf16>, vector<128x128xbf16>, vector<16x128xf32> -> vector<16x128xf32>
    %c0_13 = arith.constant 0 : index
    %c0_14 = arith.constant 0 : index
    %15 = vector.load %arg6[%c0_13, %c0_14] : memref<1x128xf32, #tpu.memory_space<vmem>>, vector<1x128xf32>
    %16 = vector.broadcast %15 : vector<1x128xf32> to vector<16x128xf32>
    %17 = arith.addf %14, %16 : vector<16x128xf32>
    %cst_15 = arith.constant 0.000000e+00 : f32
    %18 = vector.broadcast %cst_15 : f32 to vector<16x128xf32>
    %19 = arith.maximumf %17, %18 : vector<16x128xf32>
    %20 = arith.truncf %19 : vector<16x128xf32> to vector<16x128xbf16>
    %21 = vector.extract_strided_slice %20 {offsets = [0, 0], sizes = [8, 128], strides = [1, 1]} : vector<16x128xbf16> to vector<8x128xbf16>
    %22 = vector.extract_strided_slice %20 {offsets = [8, 0], sizes = [8, 128], strides = [1, 1]} : vector<16x128xbf16> to vector<8x128xbf16>
    %cst_16 = arith.constant dense<0.000000e+00> : vector<8x8xf32>
    %23 = tpu.matmul %21, %22, %cst_16 {dimension_numbers = #tpu.dot_dimension_numbers<[1], [1], [0], [0], [0, 0, 1, 0], [], []>} : vector<8x128xbf16>, vector<8x128xbf16>, vector<8x8xf32> -> vector<8x8xf32>
    %c0_17 = arith.constant 0 : index
    %c0_18 = arith.constant 0 : index
    %24 = vector.load %arg7[%c0_17, %c0_18] : memref<8x8xf32, #tpu.memory_space<vmem>>, vector<8x8xf32>
    %25 = arith.addf %23, %24 : vector<8x8xf32>
    %cst_19 = arith.constant dense<0xFF800000> : vector<8xf32>
    %26 = vector.multi_reduction <maximumf>, %25, %cst_19 [1] : vector<8x8xf32> to vector<8xf32>
    %27 = vector.shape_cast %26 : vector<8xf32> to vector<8x1xf32>
    %28 = vector.broadcast %27 : vector<8x1xf32> to vector<8x8xf32>
    %29 = arith.subf %25, %28 : vector<8x8xf32>
    %30 = math.exp %29 : vector<8x8xf32>
    %cst_20 = arith.constant dense<0.000000e+00> : vector<8xf32>
    %31 = vector.multi_reduction <add>, %30, %cst_20 [1] : vector<8x8xf32> to vector<8xf32>
    %32 = vector.shape_cast %31 : vector<8xf32> to vector<8x1xf32>
    %33 = tpu.reciprocal %32 {approx = true} : vector<8x1xf32> -> vector<8x1xf32>
    %cst_21 = arith.constant dense<0xFF800000> : vector<8xf32>
    %34 = vector.multi_reduction <maximumf>, %25, %cst_21 [0] : vector<8x8xf32> to vector<8xf32>
    %35 = vector.shape_cast %34 : vector<8xf32> to vector<1x8xf32>
    %36 = vector.broadcast %35 : vector<1x8xf32> to vector<8x8xf32>
    %37 = arith.subf %25, %36 : vector<8x8xf32>
    %38 = math.exp %37 : vector<8x8xf32>
    %cst_22 = arith.constant dense<0.000000e+00> : vector<8xf32>
    %39 = vector.multi_reduction <add>, %38, %cst_22 [0] : vector<8x8xf32> to vector<8xf32>
    %40 = vector.shape_cast %39 : vector<8xf32> to vector<1x8xf32>
    %41 = tpu.reciprocal %40 {approx = true} : vector<1x8xf32> -> vector<1x8xf32>
    %42 = vector.shape_cast %0 : vector<1x8x32xbf16> to vector<8x32xbf16>
    %43 = vector.shape_cast %1 : vector<1x8x32xbf16> to vector<8x32xbf16>
    %44 = arith.truncf %30 : vector<8x8xf32> to vector<8x8xbf16>
    %cst_23 = arith.constant dense<0.000000e+00> : vector<8x32xf32>
    %45 = tpu.matmul %44, %43, %cst_23 {dimension_numbers = #tpu.dot_dimension_numbers<[1], [0], [0], [1], [0, 0, 1, 1], [], []>} : vector<8x8xbf16>, vector<8x32xbf16>, vector<8x32xf32> -> vector<8x32xf32>
    %46 = vector.broadcast %33 : vector<8x1xf32> to vector<8x32xf32>
    %47 = arith.mulf %45, %46 : vector<8x32xf32>
    %48 = vector.broadcast %41 : vector<1x8xf32> to vector<8x8xf32>
    %49 = arith.mulf %38, %48 : vector<8x8xf32>
    %50 = arith.truncf %49 : vector<8x8xf32> to vector<8x8xbf16>
    %cst_24 = arith.constant dense<0.000000e+00> : vector<8x32xf32>
    %51 = tpu.matmul %50, %42, %cst_24 {dimension_numbers = #tpu.dot_dimension_numbers<[0], [0], [1], [1], [0, 1, 1, 1], [], []>} : vector<8x8xbf16>, vector<8x32xbf16>, vector<8x32xf32> -> vector<8x32xf32>
    %52 = vector.shape_cast %47 : vector<8x32xf32> to vector<1x8x32xf32>
    %c0_25 = arith.constant 0 : index
    %c0_26 = arith.constant 0 : index
    %c0_27 = arith.constant 0 : index
    %53 = vector.load %arg8[%c0_25, %c0_26, %c0_27] : memref<1x8x32xf32, #tpu.memory_space<vmem>>, vector<1x8x32xf32>
    tpu.vector_store %arg8[%c0_25, %c0_26, %c0_27], %52 {strides = array<i32>} : memref<1x8x32xf32, #tpu.memory_space<vmem>>, vector<1x8x32xf32>,
    %54 = vector.shape_cast %51 : vector<8x32xf32> to vector<1x8x32xf32>
    %c0_28 = arith.constant 0 : index
    %c0_29 = arith.constant 0 : index
    %c0_30 = arith.constant 0 : index
    %55 = vector.load %arg9[%c0_28, %c0_29, %c0_30] : memref<1x8x32xf32, #tpu.memory_space<vmem>>, vector<1x8x32xf32>
    tpu.vector_store %arg9[%c0_28, %c0_29, %c0_30], %54 {strides = array<i32>} : memref<1x8x32xf32, #tpu.memory_space<vmem>>, vector<1x8x32xf32>,
    return
  }
  func.func @transform_0(%arg0: i32) -> (i32, i32, i32) {
    %c0_i32 = arith.constant 0 : i32
    %c0_i32_0 = arith.constant 0 : i32
    %c0_i32_1 = arith.constant 0 : i32
    return %arg0, %c0_i32, %c0_i32_0 : i32, i32, i32
  }
  func.func @transform_1(%arg0: i32) -> (i32, i32, i32) {
    %c0_i32 = arith.constant 0 : i32
    %c0_i32_0 = arith.constant 0 : i32
    %c0_i32_1 = arith.constant 0 : i32
    return %arg0, %c0_i32, %c0_i32_0 : i32, i32, i32
  }
  func.func @transform_2(%arg0: i32) -> (i32, i32) {
    %c0_i32 = arith.constant 0 : i32
    %c0_i32_0 = arith.constant 0 : i32
    %c0_i32_1 = arith.constant 0 : i32
    return %c0_i32, %c0_i32_0 : i32, i32
  }
  func.func @transform_3(%arg0: i32) -> (i32, i32) {
    %c0_i32 = arith.constant 0 : i32
    %c0_i32_0 = arith.constant 0 : i32
    %c0_i32_1 = arith.constant 0 : i32
    return %c0_i32, %c0_i32_0 : i32, i32
  }
  func.func @transform_4(%arg0: i32) -> (i32, i32) {
    %c0_i32 = arith.constant 0 : i32
    %c0_i32_0 = arith.constant 0 : i32
    %c0_i32_1 = arith.constant 0 : i32
    return %c0_i32, %c0_i32_0 : i32, i32
  }
  func.func @transform_5(%arg0: i32) -> (i32, i32) {
    %c0_i32 = arith.constant 0 : i32
    %c0_i32_0 = arith.constant 0 : i32
    %c0_i32_1 = arith.constant 0 : i32
    return %c0_i32, %c0_i32_0 : i32, i32
  }
  func.func @transform_6(%arg0: i32) -> (i32, i32) {
    %c0_i32 = arith.constant 0 : i32
    %c0_i32_0 = arith.constant 0 : i32
    %c0_i32_1 = arith.constant 0 : i32
    return %c0_i32, %c0_i32_0 : i32, i32
  }
  func.func @transform_7(%arg0: i32) -> (i32, i32, i32) {
    %c0_i32 = arith.constant 0 : i32
    %c0_i32_0 = arith.constant 0 : i32
    %c0_i32_1 = arith.constant 0 : i32
    return %arg0, %c0_i32, %c0_i32_0 : i32, i32, i32
  }
  func.func @transform_8(%arg0: i32) -> (i32, i32, i32) {
    %c0_i32 = arith.constant 0 : i32
    %c0_i32_0 = arith.constant 0 : i32
    %c0_i32_1 = arith.constant 0 : i32
    return %arg0, %c0_i32, %c0_i32_0 : i32, i32, i32
  }
}

</mosaic_0001>

<bundles_post_ra>
// kernel: tpu_custom_call.1
= control target key start
LH: loop header
LB: loop body
LE: loop exit
PB: predicated region body
PF: predicated region fallthrough
CT: control target
= control target key end

     0   :  { %s1801_s0 = inlined_call_operand.hbm [shape: bf16[2,8,32], index: 0, kind: input, shape index: {}]   ;;  %s1802_s1 = inlined_call_operand.hbm [shape: bf16[2,8,32], index: 1, kind: input, shape index: {}]   ;;  %s1803_s2 = inlined_call_operand.hbm [shape: bf16[32,128], index: 2, kind: input, shape index: {}]   ;;  %s1804_s3 = inlined_call_operand.vmem [shape: f32[1,128], index: 3, kind: input, shape index: {}]   ;;  %s1805_s4 = inlined_call_operand.hbm [shape: bf16[128,128], index: 4, kind: input, shape index: {}]   ;;  %s1806_s5 = inlined_call_operand.vmem [shape: f32[1,128], index: 5, kind: input, shape index: {}]   ;;  %s1807_s6 = inlined_call_operand.vmem [shape: f32[8,8], index: 6, kind: input, shape index: {}]   ;;  %s1808_s7 = inlined_call_operand.hbm [shape: f32[2,8,32], index: 7, kind: output, shape index: {0}]   ;;  %s1809_s8 = inlined_call_operand.hbm [shape: f32[2,8,32], index: 8, kind: output, shape index: {1}]  }
   0x1   :  { %1817 = sst [smem:[#allocation22_spill]] %s1803_s2 }
   0x2   :  { %1818 = sst [smem:[#allocation23_spill]] %s1805_s4 }
   0x3   :  { %14 = vsyncpa [#allocation3], 0 }
   0x4   :  { %16 = vsyncpa [#allocation3 + $0x1], 0 }
   0x5   :  { %17 = vsyncpa [#allocation6], 0 }
   0x6   :  { %19 = vsyncpa [#allocation6 + $0x1], 0 }
   0x7   :  { %20 = vsyncpa [#allocation9], 0 }
   0x8   :  { %21 = vsyncpa [#allocation4], 0 }
   0x9   :  { %23 = vsyncpa [#allocation4 + $0x1], 0 }
   0xa   :  { %24 = vsyncpa [#allocation12], 0 }
   0xb   :  { %26 = vsyncpa [#allocation12 + $0x1], 0  ;;  %s1440_s27 = smov 0   ;;  %s1442_s28 = smov 0  }
   0xc   :  { %s1444_s29 = smov 0   ;;  %s1446_s30 = smov 0  }
   0xd LB: > { %1819 = sst [smem:[#allocation19_spill]] %s1379_s29  ;;  %s1461_s9 = sadd.s32 4294967295, %s1383_s30   ;;  %s1383_s30 = sphi %s1446_s30, %s1840_s30   ;;  %s1379_s29 = sphi %s1444_s29, %s1842_s29   ;;  %s1375_s28 = sphi %s1442_s28, %s1844_s28   ;;  %s1371_s27 = sphi %s1440_s27, %s1843_s27  }
   0xe   : > { %s954_s10 = sadd.s32 4294967294, %s1383_s30   ;;  %p52_p0 = scmp.ne.s32.totalorder %s1375_s28, %s1371_s27 }
   0xf   : > { %p1810_p1 = scmp.eq.s32.totalorder %s1461_s9, 0  ;;  %p213_p3 = scmp.eq.s32.totalorder %s954_s10, 1 }
  0x10   : > { %p955_p5 = scmp.ge.s32.totalorder %s1383_s30, 1  ;;  %p246_p7 = scmp.lt.s32.totalorder %s1383_s30, 3 }
  0x11   : > { %p1470_p4 = por %p1810_p1, %p52_p0  ;;  %p1475_p6 = por %p213_p3, %p52_p0 }
  0x12   : > { %p1480_p8 = pnand %p955_p5, %p246_p7  ;;  %s1385_s14 = smov [#allocation7]  }
  0x13   : > { %s1820_s11 = scalar_select %p1470_p4, 1, 0 }
  0x14   : > { %s1821_s12 = scalar_select %p1475_p6, 1, 0 }
  0x15   : > { %s1822_s13 = scalar_select %p1480_p8, 1, 0 }
  0x16   : > { %s258_s15 = sshll.u32 %s1385_s14, 4  ;;  %p1072_p9 = pneg %p1480_p8  ;;  %s1484_s15 = int_to_ptr.vmem [resolvable:$true] %s258_s15 }
  0x17   : > { %s1386_s17 = smov [#allocation8]   ;;  %s1824_s2 = sld [smem:[#allocation22_spill]] }
  0x18   : > { %p1491_p11 = pnand %p1072_p9, %p1810_p1  ;;  %s274_s18 = sshll.u32 %s1386_s17, 4  ;;  %s1495_s18 = int_to_ptr.vmem [resolvable:$true] %s274_s18 }
  0x1a   : > { %p1159_p13 = pneg %p1491_p11 }
  0x1d   : > { %s1157_s21 = scalar_lea.hbm %s1824_s2, 256 }
  0x1e   : > { %p1158_p12 = scmp.ne.s32.totalorder %s1824_s2, %s1157_s21  ;;  %p1164_p5 = scmp.lt.u32.totalorder %s1157_s21, %s1824_s2 }
  0x20   : > { %p1160_p0 = pnand %p1159_p13, %p1158_p12 }
  0x22   : > { %p1161_p3 = pneg %p1160_p0 }
  0x24   : > { %p1166_p7 = pnand %p1164_p5, %p1161_p3 }
  0x26   : > { %1169 = shalt.err (!%p1166_p7)
}
  0x27   : > { %s1170_s26 = scalar_lea.vmem %s1484_s15, 256  ;;  %p1178_p2 = scmp.lt.s32.totalorder %s1484_s15, %s1484_s15 }
  0x28   : > { %p1171_p9 = scmp.ne.s32.totalorder %s1484_s15, %s1170_s26  ;;  %p1179_p12 = scmp.lt.s32.totalorder %s1170_s26, %s1170_s26 }
  0x2a   : > { %p1173_p10 = pnand %p1171_p9, %p1159_p13  ;;  %p1180_p0 = por %p1179_p12, %p1178_p2 }
  0x2c   : > { %p1174_p1 = pneg %p1173_p10 }
  0x2e   : > { %p1181_p6 = pnand %p1180_p0, %p1174_p1 }
  0x30   : > { %1184 = shalt.err (!%p1181_p6)
}
  0x31   : > { %s1387_s10 = smov 64   ;;  %s1388_s14 = smov 4  }
  0x32   : > { %1075 = dma.hbm_to_vmem [thread:$0]  (!%p1491_p11), %s1824_s2, 256, %s1484_s15, [#allocation6], %s1387_s10, %s1387_s10, %s1388_s14  }
  0x33   : > { %s1825_s4 = sld [smem:[#allocation23_spill]] }
  0x39   : > { %s1185_s22 = scalar_lea.hbm %s1825_s4, 1024 }
  0x3a   : > { %p1186_p2 = scmp.ne.s32.totalorder %s1825_s4, %s1185_s22  ;;  %p1192_p10 = scmp.lt.u32.totalorder %s1185_s22, %s1825_s4 }
  0x3c   : > { %p1188_p1 = pnand %p1186_p2, %p1159_p13 }
  0x3e   : > { %p1189_p6 = pneg %p1188_p1 }
  0x40   : > { %p1194_p3 = pnand %p1192_p10, %p1189_p6 }
  0x42   : > { %1197 = shalt.err (!%p1194_p3)
}
  0x43   : > { %s1198_s15 = scalar_lea.vmem %s1495_s18, 1024  ;;  %p1206_p12 = scmp.lt.s32.totalorder %s1495_s18, %s1495_s18 }
  0x44   : > { %p1199_p5 = scmp.ne.s32.totalorder %s1495_s18, %s1198_s15  ;;  %p1207_p0 = scmp.lt.s32.totalorder %s1198_s15, %s1198_s15 }
  0x46   : > { %p1201_p7 = pnand %p1199_p5, %p1159_p13  ;;  %p1208_p2 = por %p1207_p0, %p1206_p12 }
  0x48   : > { %p1202_p9 = pneg %p1201_p7 }
  0x4a   : > { %p1209_p1 = pnand %p1208_p2, %p1202_p9 }
  0x4c   : > { %1212 = shalt.err (!%p1209_p1)
}
  0x4d   : > { %1078 = dma.hbm_to_vmem [thread:$0]  (!%p1491_p11), %s1825_s4, 1024, %s1495_s18, [#allocation9], %s1387_s10, %s1387_s10, %s1388_s14  }
  0x4e   : > { %s1550_s20 = sadd.s32 1, %s1383_s30   ;;  %s39_s16 = sadd.s32 1, %s1379_s29 }
  0x4f   : > { %1826 = sst [smem:[#allocation20_spill]] %s1550_s20  ;;  %s36_s21 = ssub.s32 %s1383_s30, %s1550_s20 }
  0x50   : > { %p46_p13 = scmp.ne.s32.totalorder %s1379_s29, %s1375_s28  ;;  %p37_p6 = scmp.eq.s32.totalorder %s36_s21, 0 }
  0x51   : > { %p47_p10 = scmp.eq.s32.totalorder %s1383_s30, 0  ;;  %p1827_p3 = scmp.eq.s32.totalorder %s1461_s9, 1 }
  0x52   : > { %p1095_p7 = scmp.lt.s32.totalorder %s1383_s30, 2  ;;  %s294_s24 = sand.u32 1, %s1379_s29  }
  0x53   : > { %p1560_p5 = por %p1827_p3, %p46_p13  ;;  %p48_p9 = por %p47_p10, %p46_p13 }
  0x54   : > { %s1566_s23 = scalar_select %p37_p6, %s1379_s29, %s39_s16  }
  0x55   : > { %s1828_s22 = scalar_select %p1560_p5, 1, 0 }
  0x56   : > { %1829 = sst [smem:[#allocation21_spill]] %s1566_s23  ;;  %s1569_s18 = sshll.u32 %s294_s24, 2 }
  0x57   : > { %s960_s10 = sshll.u32 %s1383_s30, 6  ;;  %s298_s15 = scalar_lea.vmem [#allocation2], %s1569_s18 }
  0x58   : > { %s1575_s26 = scalar_lea.hbm %s1801_s0, %s960_s10  ;;  %s305_s17 = sshll.u32 %s298_s15, 4  ;;  %s1578_s17 = int_to_ptr.vmem [resolvable:$true] %s305_s17 }
  0x59   : > { %p1580_p11 = pnand %p1095_p7, %p48_p9  ;;  %s1587_s14 = scalar_lea.hbm %s1802_s1, %s960_s10 }
  0x5a   : > { %s312_s25 = sand.u32 1, %s1383_s30   ;;  %s295_s2 = scalar_lea.sflag [#allocation3], %s294_s24 }
  0x5b   : > { %s1213_s4 = scalar_lea.hbm %s1575_s26, 64  ;;  %p1215_p0 = pneg %p1580_p11 }
  0x5c   : > { %p1214_p12 = scmp.ne.s32.totalorder %s1575_s26, %s1213_s4  ;;  %s1218_s29 = scalar_lea.hbm %s1801_s0, 128 }
  0x5d   : > { %p1219_p13 = scmp.lt.u32.totalorder %s1575_s26, %s1801_s0  ;;  %p1220_p6 = scmp.lt.u32.totalorder %s1218_s29, %s1213_s4 }
  0x5e   : > { %p1216_p2 = pnand %p1215_p0, %p1214_p12  ;;  %p1222_p3 = scmp.lt.u32.totalorder %s1213_s4, %s1575_s26 }
  0x5f   : > { %p1221_p10 = por %p1220_p6, %p1219_p13 }
  0x60   : > { %p1217_p1 = pneg %p1216_p2 }
  0x61   : > { %p1223_p7 = por %p1222_p3, %p1221_p10 }
  0x63   : > { %p1224_p9 = pnand %p1223_p7, %p1217_p1 }
  0x65   : > { %1227 = shalt.err (!%p1224_p9)
}
  0x66   : > { %s1228_s24 = scalar_lea.vmem %s1578_s17, 64  ;;  %s1389_s23 = smov [#allocation2]  }
  0x67   : > { %p1229_p12 = scmp.ne.s32.totalorder %s1578_s17, %s1228_s24  ;;  %s1233_s10 = sshll.u32 %s1389_s23, 4  ;;  %s1234_s10 = int_to_ptr.vmem [resolvable:$false] %s1233_s10 }
  0x68   : > { %s1235_s20 = scalar_lea.vmem %s1234_s10, 128  ;;  %p1236_p4 = scmp.lt.s32.totalorder %s1578_s17, %s1234_s10 }
  0x69   : > { %p1231_p2 = pnand %p1229_p12, %p1215_p0  ;;  %p1237_p13 = scmp.lt.s32.totalorder %s1235_s20, %s1228_s24 }
  0x6b   : > { %p1232_p5 = pneg %p1231_p2  ;;  %p1238_p6 = por %p1237_p13, %p1236_p4 }
  0x6d   : > { %p1239_p10 = pnand %p1238_p6, %p1232_p5 }
  0x6f   : > { %1242 = shalt.err (!%p1239_p10)
}
  0x70   : > { %1082 = dma.hbm_to_vmem [thread:$0]  (!%p1580_p11), %s1575_s26, 64, %s1578_s17, %s295_s2  }
  0x71   : > { %s316_s4 = scalar_lea.vmem [#allocation5], %s1569_s18  ;;  %s313_s21 = scalar_lea.sflag [#allocation6], %s312_s25 }
  0x72   : > { %s323_s29 = sshll.u32 %s316_s4, 4  ;;  %s1243_s15 = scalar_lea.hbm %s1587_s14, 64  ;;  %s324_s29 = int_to_ptr.vmem [resolvable:$true] %s323_s29 }
  0x73   : > { %p1244_p4 = scmp.ne.s32.totalorder %s1587_s14, %s1243_s15  ;;  %s1248_s23 = scalar_lea.hbm %s1802_s1, 128 }
  0x74   : > { %p1249_p3 = scmp.lt.u32.totalorder %s1587_s14, %s1802_s1  ;;  %p1250_p7 = scmp.lt.u32.totalorder %s1248_s23, %s1243_s15 }
  0x75   : > { %p1246_p5 = pnand %p1244_p4, %p1215_p0  ;;  %p1252_p12 = scmp.lt.u32.totalorder %s1243_s15, %s1587_s14 }
  0x76   : > { %p1251_p9 = por %p1250_p7, %p1249_p3 }
  0x77   : > { %p1247_p1 = pneg %p1246_p5 }
  0x78   : > { %p1253_p2 = por %p1252_p12, %p1251_p9 }
  0x7a   : > { %p1254_p13 = pnand %p1253_p2, %p1247_p1 }
  0x7c   : > { %1257 = shalt.err (!%p1254_p13)
}
  0x7d   : > { %s1258_s2 = scalar_lea.vmem %s324_s29, 64  ;;  %s1390_s18 = smov [#allocation5]  }
  0x7e   : > { %p1259_p6 = scmp.ne.s32.totalorder %s324_s29, %s1258_s2  ;;  %s1263_s26 = sshll.u32 %s1390_s18, 4  ;;  %s1264_s26 = int_to_ptr.vmem [resolvable:$false] %s1263_s26 }
  0x7f   : > { %s1265_s17 = scalar_lea.vmem %s1264_s26, 128  ;;  %p1266_p5 = scmp.lt.s32.totalorder %s324_s29, %s1264_s26 }
  0x80   : > { %p1261_p10 = pnand %p1259_p6, %p1215_p0  ;;  %p1267_p8 = scmp.lt.s32.totalorder %s1265_s17, %s1258_s2 }
  0x82   : > { %p1262_p4 = pneg %p1261_p10  ;;  %p1268_p3 = por %p1267_p8, %p1266_p5 }
  0x84   : > { %p1269_p7 = pnand %p1268_p3, %p1262_p4 }
  0x86   : > { %1272 = shalt.err (!%p1269_p7)
}
  0x87   : > { %1085 = dma.hbm_to_vmem [thread:$0]  (!%p1580_p11), %s1587_s14, 64, %s324_s29, %s313_s21  }
  0x88   : > { %p1831_p1 = scmp.ne.s32.totalorder %s1822_s13, 0 }
  0x89   : > { %s1640_s25 = sand.u32 (!%p1831_p1), 1, %s1375_s28   ;;  %p1832_p0 = scmp.ne.s32.totalorder (!%p1831_p1), %s1820_s11, 0 }
  0x8a   : > { %332 = sbr.rel (%p1831_p1) target bundleno = 1239 (0x4d7), region = 48  ;;  %s964_s4 = sshll.u32 (!%p1831_p1), %s1640_s25, 2 }
  0x8b   : > { %s335_s15 = scalar_lea.sflag (!%p1831_p1), [#allocation3], %s1640_s25  ;;  %s338_s16 = scalar_lea.vmem (!%p1831_p1), [#allocation2], %s964_s4 }
  0x91   : > { %1346 = dma.done.wait (%p1832_p0), %s335_s15, 64  }
  0x92   : > { %1348 = vsyncadd (%p1832_p0), %s335_s15, 4294967232  ;;  %s343_s19 = sand.u32 1, %s1461_s9   ;;  %s347_s13 = scalar_lea.vmem [#allocation5], %s964_s4 }
  0x93   : > { %s344_s14 = scalar_lea.sflag [#allocation6], %s343_s19 }
  0x94   : > { %1350 = dma.done.wait (%p1832_p0), %s344_s14, 64  }
  0x95   : > { %1352 = vsyncadd (%p1832_p0), %s344_s14, 4294967232  ;;  %p1833_p8 = scmp.eq.s32.totalorder %s1461_s9, 0 }
  0x97   : > { %1354 = dma.done.wait (%p1833_p8), [#allocation6], 256   ;;  %p1834_p11 = pmov %p1833_p8 }
  0x98   : > { %p1835_p9 = pmov %p1833_p8 }
  0x99   : > { %1356 = vsyncadd (%p1834_p11), [#allocation6], 4294967040 }
  0x9a   : > { %1358 = dma.done.wait (%p1835_p9), [#allocation9], 1024   ;;  %p1836_p12 = pmov %p1833_p8 }
  0x9b   : > { %v1391_v0 = vmov 0.0   ;;  %vm1392_vm0 = vmmov 0   ;;  %v1138_v1 = vld [vmem:[#allocation7] sm:$0xff]   ;;  %v1139_v2 = vld [vmem:[#allocation7 + $0x8] sm:$0xff]   ;;  %v1667_v3 = vld [vmem:[%s338_s16] sm:$0xf] }
  0x9c   : > { %1360 = vsyncadd (%p1836_p12), [#allocation9], 4294966272  ;;  %1010 = vmatprep.subr.bf16.mxu0 %v1391_v0  ;;  %1014 = vmatprep.mubr.msk.bf16.mxu0 %vm1392_vm0, %v1391_v0  ;;  %v1669_v4 = vld [vmem:[%s347_s13] sm:$0xf]  ;;  %vm404_vm1 = vcmask 1043456   ;;  %v1141_v6 = vld [vmem:[#allocation8] sm:$0xff]  }
  0x9d   : > { %1018 = vmatprep.subr.bf16.mxu1 %v1391_v0  ;;  %1034 = vmatprep.mubr.msk.bf16.mxu1 %vm1392_vm0, %v1391_v0  ;;  %v970_v5 = vcombine.low %v1669_v4, %v1669_v4  ;;  %v1142_v7 = vld [vmem:[#allocation8 + $0x8] sm:$0xff]   ;;  %vm431_vm2 = vcmask 261120   ;;  %v1143_v9 = vld [vmem:[#allocation8 + $0x10] sm:$0xff]   ;;  %v1144_v10 = vld [vmem:[#allocation8 + $0x18] sm:$0xff]   ;;  %vm637_vm3 = vcmask 64512   ;;  %v670_v51 = vsel %vm404_vm1, %v1669_v4, 0 }
  0x9e   : > { %1011 = vmatpush3.bf16.msra.mxu0 %v1138_v1  ;;  %1019 = vmatpush3.bf16.msra.mxu1 %v1141_v6  ;;  %v1145_v11 = vld [vmem:[#allocation8 + $0x20] sm:$0xff]   ;;  %v1146_v12 = vld [vmem:[#allocation8 + $0x28] sm:$0xff]   ;;  %v1147_v13 = vld [vmem:[#allocation8 + $0x30] sm:$0xff]   ;;  %s968_s20 = sshll.u32 %s1640_s25, 3  ;;  %s988_s2 = sshll.u32 %s1461_s9, 7 }
  0x9f   : > { %1012 = vmatprep.subr.bf16.mxu0 %v1391_v0  ;;  %v407_v8 = vsel %vm404_vm1, %v1667_v3, %v970_v5  ;;  %1020 = vmatprep.subr.bf16.mxu1 %v1391_v0  ;;  %v1148_v14 = vld [vmem:[#allocation8 + $0x38] sm:$0xff]   ;;  %v971_v15 = vld [vmem:[%s1804_s3] ss:$0 sm:$0xff]  ;;  %s390_s18 = scalar_lea.vmem [#allocation10], %s968_s20  ;;  %s1718_s15 = scalar_lea.hbm %s1808_s7, %s988_s2 }
  0xa0   : > { %v975_v25 = vld [vmem:[%s1806_s5] ss:$0 sm:$0xff]  ;;  %s797_s26 = sshll.u32 %s390_s18, 4  ;;  %s1723_s16 = scalar_lea.vmem [#allocation11], %s968_s20  ;;  %s1720_s26 = int_to_ptr.vmem [resolvable:$true] %s797_s26 }
  0xa1   : > { %v593_v36 = vld [vmem:[%s1807_s6] sm:$0xff]  ;;  %s810_s19 = sshll.u32 %s1723_s16, 4  ;;  %s779_s14 = scalar_lea.sflag [#allocation4], %s1640_s25  ;;  %s1757_s19 = int_to_ptr.vmem [resolvable:$true] %s810_s19 }
  0xa2   : > { %1013 = vmatpush3.bf16.msra.mxu0 %v1139_v2  ;;  %1021 = vmatpush3.bf16.msra.mxu1 %v1142_v7  ;;  %v734_v7 = vsel %vm404_vm1, %v1667_v3, 0  ;;  %s1273_s13 = scalar_lea.vmem %s1720_s26, 128  ;;  %p1837_p13 = scmp.ne.s32.totalorder %s1828_s22, 0 }
  0xa3   : > { %1038 = vmatprep.subr.bf16.mxu0 %v1391_v0  ;;  %1022 = vmatprep.subr.bf16.mxu1 %v1391_v0  ;;  %p1274_p2 = scmp.ne.s32.totalorder %s1720_s26, %s1273_s13  ;;  %s1393_s11 = smov [#allocation10]  }
  0xa4   : > { %s1277_s29 = sshll.u32 %s1393_s11, 4  ;;  %s1278_s29 = int_to_ptr.vmem [resolvable:$false] %s1277_s29 }
  0xa5   : > { %1015 = vmatmul.mubr.msk.bf16.vlgmr.msra.gmra.mrb[0].mxu0 %vm431_vm2, %v407_v8  ;;  %p1275_p6 = pnand %p1274_p2, %p1837_p13  ;;  %s1279_s21 = scalar_lea.vmem %s1278_s29, 256 }
  0xa6   : > { %1040 = vmatprep.mubr.msk.bf16.mxu0 %vm1392_vm0, %v1391_v0  ;;  %1023 = vmatpush3.bf16.msra.mxu1 %v1143_v9  ;;  %p1280_p4 = scmp.lt.s32.totalorder %s1720_s26, %s1278_s29  ;;  %p1281_p5 = scmp.lt.s32.totalorder %s1279_s21, %s1273_s13 }
  0xa7   : > { %1024 = vmatprep.subr.bf16.mxu1 %v1391_v0  ;;  %p1276_p10 = pneg %p1275_p6 }
  0xa8   : > { %p1282_p3 = por %p1281_p5, %p1280_p4 }
  0xaa   : > { %1025 = vmatpush3.bf16.msra.mxu1 %v1144_v10  ;;  %p1283_p7 = pnand %p1282_p3, %p1276_p10 }
  0xab   : > { %1026 = vmatprep.subr.bf16.mxu1 %v1391_v0 }
  0xae   : > { %1027 = vmatpush3.bf16.msra.mxu1 %v1145_v11 }
  0xaf   : > { %1028 = vmatprep.subr.bf16.mxu1 %v1391_v0 }
  0xb2   : > { %1029 = vmatpush3.bf16.msra.mxu1 %v1146_v12 }
  0xb3   : > { %1030 = vmatprep.subr.bf16.mxu1 %v1391_v0 }
  0xb6   : > { %1031 = vmatpush3.bf16.msra.mxu1 %v1147_v13 }
  0xb7   : > { %1032 = vmatprep.subr.bf16.mxu1 %v1391_v0 }
  0xba   : > { %1033 = vmatpush3.bf16.msra.mxu1 %v1148_v14 }
 0x178   : > { %v468_v16 = vpop.f32.mrb[0].mxu0 }
 0x179   : > { %v469_v17 = vadd.f32 %v971_v15, %v468_v16  ;;  %v1016_v18 = vpop.f32.mrb[1].mxu0 }
 0x17a   : > { %v471_v19 = vpop.f32.mrb[2].mxu0 }
 0x17b   : > { %v472_v20 = vadd.f32 %v971_v15, %v471_v19  ;;  %v1017_v21 = vpop.f32.mrb[3].mxu0  ;;  %v475_v22 = vmax.f32 %v469_v17, 0.0 }
 0x17d   : > { %v476_v23 = vmax.f32 %v472_v20, 0.0 }
 0x17f   : > { %v477_v24 = vpack.c.bf16 %v476_v23, %v475_v22 }
 0x181   : > { %1035 = vmatmul.mubr.bf16.vlgmr.msra.gmra.mrb[0].mxu1 %v477_v24 }
 0x254   : > { %v583_v26 = vpop.f32.mrb[0].mxu1 }
 0x255   : > { %v584_v27 = vadd.f32 %v975_v25, %v583_v26  ;;  %v1036_v28 = vpop.f32.mrb[1].mxu1 }
 0x256   : > { %v586_v29 = vpop.f32.mrb[2].mxu1 }
 0x257   : > { %v587_v30 = vadd.f32 %v975_v25, %v586_v29  ;;  %v1037_v31 = vpop.f32.mrb[3].mxu1  ;;  %v590_v32 = vmax.f32 %v584_v27, 0.0 }
 0x259   : > { %v591_v33 = vmax.f32 %v587_v30, 0.0 }
 0x25b   : > { %v592_v34 = vpack.c.bf16 %v591_v33, %v590_v32 }
 0x25d   : > { %v595_v35 = vrot.slane %v592_v34, 4 }
 0x25f   : > { %1039 = vmatpush3.bf16.xpose.msra.mxu0 %v595_v35 }
 0x260   : > { %1044 = vmatprep.subr.bf16.mxu0 %v1391_v0 }
 0x266   : > { %1041 = vmatmul.mubr.bf16.vlgmr.msra.gmra.mrb[4].mxu0 %v592_v34 }
 0x267   : > { %1046 = vmatprep.mubr.msk.bf16.mxu0 %vm1392_vm0, %v1391_v0  ;;  %1045 = vmatpush3.bf16.msra.mxu0 %v670_v51 }
 0x268   : > { %1050 = vmatprep.subr.bf16.mxu0 %v1391_v0 }
 0x339   : > { %v631_v37 = vpop.f32.mrb[4].mxu0 }
 0x33a   : > { %v632_v38 = vadd.f32 %v631_v37, %v593_v36  ;;  %v1042_v39 = vpop.f32.mrb[5].mxu0 }
 0x33b   : > { %v634_v40 = vpop.f32.mrb[6].mxu0 }
 0x33c   : > { %v1043_v41 = vpop.f32.mrb[7].mxu0  ;;  %v638_v42 = vsel %vm637_vm3, %v632_v38, -inf }
 0x33d   : > { %639 = vmax.xlane.f32.xlu0 %v638_v42  ;;  %v648_v43 = vrot.slane %v638_v42, 4 }
 0x33f   : > { %v649_v44 = vmax.f32 %v638_v42, %v648_v43 }
 0x341   : > { %v650_v45 = vrot.slane %v649_v44, 2 }
 0x343   : > { %v651_v46 = vmax.f32 %v649_v44, %v650_v45 }
 0x345   : > { %v652_v47 = vrot.slane %v651_v46, 1 }
 0x347   : > { %v653_v48 = vmax.f32 %v651_v46, %v652_v47 }
 0x349   : > { %v654_v49 = vsub.f32 %v632_v38, %v653_v48 }
 0x34b   : > { %v655_v50 = vmul.f32 1.442695, %v654_v49 }
 0x34d   : > { %1149 = vpow2.f32 %v655_v50 }
 0x357   : > { %v1150_v52 = vpop.eup %1149 }
 0x358   : > { %v657_v53 = vsel %vm637_vm3, %v1150_v52, 0.0 }
 0x359   : > { %v658_v54 = vrot.slane %v657_v53, 4 }
 0x35b   : > { %v659_v55 = vadd.f32 %v658_v54, %v657_v53 }
 0x35d   : > { %v660_v56 = vrot.slane %v659_v55, 2 }
 0x35f   : > { %v661_v57 = vadd.f32 %v660_v56, %v659_v55 }
 0x361   : > { %v662_v58 = vrot.slane %v661_v57, 1 }
 0x363   : > { %v663_v59 = vadd.f32 %v662_v58, %v661_v57 }
 0x365   : > { %1151 = vrcp.f32 %v663_v59 }
 0x36f   : > { %v1152_v60 = vpop.eup %1151 }
 0x370   : > { %v713_v61 = vmul.f32 %v1152_v60, %v1150_v52 }
 0x372   : > { %v714_v62 = vpack.c.bf16 %v713_v61, %v713_v61 }
 0x374   : > { %715 = vxpose.xlu0.c.b16.start.end [1/1] (short) (narrow) %v714_v62, 16 }
 0x3ca   : > { %v640_v63 = vpop.xlane.xlu0 %639 }
 0x3cb   : > { %v641_v1 = vsub.f32 %v632_v38, %v640_v63 }
 0x3cd   : > { %v642_v2 = vmul.f32 1.442695, %v641_v1 }
 0x3cf   : > { %1153 = vpow2.f32 %v642_v2 }
 0x3d9   : > { %v1154_v4 = vpop.eup %1153 }
 0x3da   : > { %v644_v5 = vsel %vm637_vm3, %v1154_v4, 0.0  ;;  %v665_v6 = vpack.c.bf16 %v1154_v4, %v1154_v4  ;;  %v723_v8 = vpop.trf.xlu0 }
 0x3db   : > { %645 = vadd.xlane.f32.xlu1 %v644_v5 }
 0x3dc   : > { %1047 = vmatmul.mubr.msk.bf16.vlgmr.msra.gmra.mrb[8].mxu0 %vm637_vm3, %v665_v6 }
 0x3dd   : > { %1051 = vmatpush3.bf16.msra.mxu0 %v734_v7  ;;  %1052 = vmatprep.mubr.msk.bf16.mxu0 %vm1392_vm0, %v1391_v0 }
 0x3e4   : > { %1053 = vmatmul.mubr.msk.bf16.vlgmr.msra.gmra.mrb[12].mxu0 %vm637_vm3, %v723_v8 }
 0x468   : > { %v646_v9 = vpop.xlane.xlu1 %645 }
 0x469   : > { %1155 = vrcp.f32 %v646_v9 }
 0x473   : > { %v1156_v3 = vpop.eup %1155 }
 0x4af   : > { %v706_v10 = vpop.f32.mrb[8].mxu0 }
 0x4b0   : > { %v712_v11 = vmul.f32 %v1156_v3, %v706_v10  ;;  %v1048_v12 = vpop.f32.mrb[9].mxu0 }
 0x4b1   : > { %v709_v0 = vpop.f32.mrb[10].mxu0 }
 0x4b2   : > { %v1049_v13 = vpop.f32.mrb[11].mxu0  ;;  %776 = vst.msk [vmem:[%s390_s18] sm:$0xff] %vm431_vm2, %v712_v11 }
 0x4b3   : > { %1286 = shalt.err (!%p1283_p7)
}
 0x4b4   : > { %s1287_s24 = scalar_lea.hbm %s1718_s15, 128  ;;  %s1291_s20 = scalar_lea.hbm %s1808_s7, 256 }
 0x4b5   : > { %p1288_p1 = scmp.ne.s32.totalorder %s1718_s15, %s1287_s24  ;;  %p1292_p11 = scmp.lt.u32.totalorder %s1718_s15, %s1808_s7 }
 0x4b6   : > { %p1293_p9 = scmp.lt.u32.totalorder %s1291_s20, %s1287_s24  ;;  %p1295_p2 = scmp.lt.u32.totalorder %s1287_s24, %s1718_s15 }
 0x4b7   : > { %p1289_p0 = pnand %p1288_p1, %p1837_p13 }
 0x4b8   : > { %p1294_p12 = por %p1293_p9, %p1292_p11 }
 0x4b9   : > { %p1290_p8 = pneg %p1289_p0 }
 0x4ba   : > { %p1296_p6 = por %p1295_p2, %p1294_p12 }
 0x4bc   : > { %p1297_p10 = pnand %p1296_p6, %p1290_p8 }
 0x4be   : > { %1300 = shalt.err (!%p1297_p10)
}
 0x4bf   : > { %1068 = dma.vmem_to_hbm [thread:$0]  (%p1837_p13), %s1720_s26, 128, %s1718_s15, %s779_s14   ;;  %v770_v14 = vpop.f32.mrb[12].mxu0 }
 0x4c0   : > { %s1753_s11 = scalar_lea.hbm %s1809_s8, %s988_s2  ;;  %777 = vst.msk [vmem:[%s1723_s16] sm:$0xff] %vm431_vm2, %v770_v14  ;;  %v1054_v15 = vpop.f32.mrb[13].mxu0  ;;  %s784_s29 = scalar_lea.sflag [#allocation12], %s1640_s25 }
 0x4c1   : > { %v773_v16 = vpop.f32.mrb[14].mxu0  ;;  %s1301_s21 = scalar_lea.vmem %s1757_s19, 128  ;;  %s1394_s9 = smov [#allocation11]  }
 0x4c2   : > { %p1302_p4 = scmp.ne.s32.totalorder %s1757_s19, %s1301_s21  ;;  %s1305_s2 = sshll.u32 %s1394_s9, 4  ;;  %s1306_s2 = int_to_ptr.vmem [resolvable:$false] %s1305_s2 }
 0x4c3   : > { %s1307_s26 = scalar_lea.vmem %s1306_s2, 256  ;;  %p1308_p7 = scmp.lt.s32.totalorder %s1757_s19, %s1306_s2 }
 0x4c4   : > { %p1303_p5 = pnand %p1302_p4, %p1837_p13  ;;  %p1309_p1 = scmp.lt.s32.totalorder %s1307_s26, %s1301_s21 }
 0x4c6   : > { %p1304_p3 = pneg %p1303_p5  ;;  %p1310_p0 = por %p1309_p1, %p1308_p7 }
 0x4c8   : > { %p1311_p8 = pnand %p1310_p0, %p1304_p3 }
 0x4ca   : > { %1314 = shalt.err (!%p1311_p8)
}
 0x4cb   : > { %s1315_s25 = scalar_lea.hbm %s1753_s11, 128  ;;  %s1319_s14 = scalar_lea.hbm %s1809_s8, 256 }
 0x4cc   : > { %p1316_p11 = scmp.ne.s32.totalorder %s1753_s11, %s1315_s25  ;;  %p1320_p2 = scmp.lt.u32.totalorder %s1753_s11, %s1809_s8 }
 0x4cd   : > { %p1321_p6 = scmp.lt.u32.totalorder %s1319_s14, %s1315_s25  ;;  %p1323_p4 = scmp.lt.u32.totalorder %s1315_s25, %s1753_s11 }
 0x4ce   : > { %p1317_p9 = pnand %p1316_p11, %p1837_p13 }
 0x4cf   : > { %p1322_p10 = por %p1321_p6, %p1320_p2 }
 0x4d0   : > { %p1318_p12 = pneg %p1317_p9 }
 0x4d1   : > { %p1324_p5 = por %p1323_p4, %p1322_p10 }
 0x4d3   : > { %p1325_p3 = pnand %p1324_p5, %p1318_p12 }
 0x4d5   : > { %1328 = shalt.err (!%p1325_p3)
}
 0x4d6   : > { %1069 = dma.vmem_to_hbm [thread:$0]  (%p1837_p13), %s1757_s19, 128, %s1753_s11, %s784_s29   ;;  %v1055_v17 = vpop.f32.mrb[15].mxu0 }
 0x4d7 PF: > { %s822_s10 = sand.u32 1, %s1371_s27   ;;  %p1838_p7 = scmp.ne.s32.totalorder %s1821_s12, 0 }
 0x4d8   : > { %p1839_p1 = scmp.ge.s32.totalorder %s1383_s30, 2  ;;  %s823_s20 = scalar_lea.sflag [#allocation4], %s822_s10 }
 0x4da   : > { %p1087_p0 = pnand %p1839_p1, %p1838_p7 }
 0x4dc   : > { %1362 = dma.done.wait (!%p1087_p0), %s823_s20, 128  }
 0x4dd   : > { %1364 = vsyncadd (!%p1087_p0), %s823_s20, 4294967168  ;;  %s832_s18 = scalar_lea.sflag [#allocation12], %s822_s10 }
 0x4de   : > { %1366 = dma.done.wait (!%p1087_p0), %s832_s18, 128  }
 0x4df   : > { %1368 = vsyncadd (!%p1087_p0), %s832_s18, 4294967168  ;;  %s1840_s30 = sld [smem:[#allocation20_spill]]  ;;  %s1841_s22 = sld [smem:[#allocation19_spill]] }
 0x4e0   : > { %s1842_s29 = sld [smem:[#allocation21_spill]]  ;;  %s1843_s27 = smov %s1375_s28 }
 0x4e5   : > { %p29_p13 = scmp.ge.s32.totalorder %s1840_s30, 4   ;;  %s1844_s28 = smov %s1841_s22 }
 0x4e7   :  { %31 = sbr.rel (!%p29_p13) target bundleno = 13 (0xd), region = 131 }
 0x4ee   :  { %837 = vsyncpa [#allocation3], 1 }
 0x4ef   :  { %839 = vsyncpa [#allocation3 + $0x1], 1 }
 0x4f0   :  { %840 = vsyncpa [#allocation6], 1 }
 0x4f1   :  { %842 = vsyncpa [#allocation6 + $0x1], 1 }
 0x4f2   :  { %843 = vsyncpa [#allocation9], 1 }
 0x4f3   :  { %844 = vsyncpa [#allocation4], 1 }
 0x4f4   :  { %846 = vsyncpa [#allocation4 + $0x1], 1 }
 0x4f5   :  { %847 = vsyncpa [#allocation12], 1 }
 0x4f6   :  { %849 = vsyncpa [#allocation12 + $0x1], 1 }

</bundles_post_ra>
